<compile_context>
chip_gen: v5e
topology: v5e:2x2
jax: 0.10.0
libtpu: 0.0.40
codegen_flags: <defaults>
</compile_context>

<pallas_src>
import numpy as np
import jax
import jax.numpy as jnp
from jax.experimental import pallas as pl
from jax.experimental.pallas import tpu as pltpu

INPUT_SIZE = 2
HIDDEN = 16
NUM_LAYERS = 3
OUT_FEATURES = 10
SUBLANE = 8


def rnn_kernel(x_ref,       # [T*Bp, I]      time-major flattened (padded-batch) input
               wih0p_ref,   # [I, 3H]        layer-0 input weights, zero-padded to 3H cols
               wbig_ref,    # [3H, 3H]       packed block weight for the wavefront update
               bwave_ref,   # [n_waves, 3H]  per-wave biases (inactive layers zeroed)
               wfc_ref,     # [H, O]         fc weight (right-multiply form)
               bfc_ref,     # [1, O]         fc bias
               out_ref):    # [Bp, O]
    BT = x_ref.shape[0]
    B = out_ref.shape[0]
    T = BT // B
    H3 = wbig_ref.shape[0]
    H = wfc_ref.shape[0]
    L = H3 // H
    n_waves = bwave_ref.shape[0]

    # ---- Hoisted loads: every weight/bias read exactly once. ----
    wbig = wbig_ref[...]
    bwave = bwave_ref[...]

    # ---- Off-chain precompute: layer-0 input projection for ALL timesteps in a
    # single matmul (padded weight -> result already [T*Bp, 3H], layer-0 cols only).
    xp_slab = jnp.dot(x_ref[...], wih0p_ref[...],
                      preferred_element_type=jnp.float32)            # [T*Bp, 3H]

    # ---- Wavefront recurrence: one matmul + one tanh per wave, no masking.
    # Packed state = [h0, h1, h2]; wave w updates layer l at timestep t = w - l.
    # bwave zeroes the bias of layers not yet active, so their state stays 0;
    # writes to layers past their last timestep are never read afterwards.
    state = jnp.zeros((B, H3), jnp.float32)
    for w in range(n_waves):
        add = bwave[w:w + 1, :]                                       # [1, 3H]
        if w < T:
            add = add + xp_slab[w * B:(w + 1) * B, :]                 # [Bp, 3H]
        state = jnp.tanh(
            jnp.dot(state, wbig, preferred_element_type=jnp.float32) + add)

    # ---- Head: fc on the last timestep of the top layer. ----
    h_top = state[:, (L - 1) * H:]                                    # [Bp, H]
    out_ref[...] = (jnp.dot(h_top, wfc_ref[...],
                            preferred_element_type=jnp.float32)
                    + bfc_ref[...])


def rnn_forward(x, packed):
    """x: [B, T, I] float32 (batch_first). Returns [B, OUT_FEATURES] float32."""
    B, T, I = x.shape
    H, H3, L = HIDDEN, NUM_LAYERS * HIDDEN, NUM_LAYERS
    n_waves = T + L - 1

    # Pad batch to the 8-row sublane tile so per-wave slab slices are aligned.
    Bp = ((B + SUBLANE - 1) // SUBLANE) * SUBLANE
    x_p = jnp.pad(x, ((0, Bp - B), (0, 0), (0, 0)))
    # Time-major flatten (tiny) -> contiguous per-wave rows, no in-kernel reshapes.
    x_tm = jnp.transpose(x_p, (1, 0, 2)).reshape(T * Bp, I)

    # Per-wave bias table: row w carries b_l only for layers active at wave w
    # (l <= w <= T-1+l), zeros elsewhere.  Built host-side, passed as an input.
    b_flat = packed["bbig"][0]                                        # [3H]
    layer_of_col = np.repeat(np.arange(L), H)                         # [3H]
    w_idx = np.arange(n_waves)[:, None]                               # [n_waves, 1]
    active = (layer_of_col[None, :] <= w_idx) & (w_idx <= T - 1 + layer_of_col[None, :])
    bwave = jnp.where(jnp.asarray(active), b_flat[None, :], 0.0).astype(jnp.float32)

    vmem = pl.BlockSpec(memory_space=pltpu.MemorySpace.VMEM)
    flops = (2 * T * Bp * I * H3
             + 2 * n_waves * Bp * H3 * H3
             + 2 * Bp * H * OUT_FEATURES)
    transcendentals = n_waves * Bp * H3
    bytes_accessed = 4 * (x_tm.size + packed["wih0p"].size + packed["wbig"].size
                          + bwave.size + packed["wfc"].size + packed["bfc"].size
                          + Bp * OUT_FEATURES)

    out = pl.pallas_call(
        rnn_kernel,
        out_shape=jax.ShapeDtypeStruct((Bp, OUT_FEATURES), jnp.float32),
        in_specs=[vmem] * 6,
        out_specs=vmem,
        cost_estimate=pl.CostEstimate(
            flops=flops,
            transcendentals=transcendentals,
            bytes_accessed=bytes_accessed),
    )(x_tm, packed["wih0p"], packed["wbig"], bwave, packed["wfc"], packed["bfc"])
    return out[:B]


def init_params(key):
    """Deterministic init mirroring PyTorch shapes (U(-1/sqrt(H), 1/sqrt(H))),
    returned in right-multiply (x @ W) form with the two RNN biases combined."""
    bound = 1.0 / jnp.sqrt(jnp.float32(HIDDEN))
    ks = jax.random.split(key, 14)

    def u(k, shape):
        return jax.random.uniform(k, shape, jnp.float32, -bound, bound)

    wih0 = u(ks[0], (HIDDEN, INPUT_SIZE)); whh0 = u(ks[1], (HIDDEN, HIDDEN))
    bih0 = u(ks[2], (HIDDEN,));            bhh0 = u(ks[3], (HIDDEN,))
    wih1 = u(ks[4], (HIDDEN, HIDDEN));     whh1 = u(ks[5], (HIDDEN, HIDDEN))
    bih1 = u(ks[6], (HIDDEN,));            bhh1 = u(ks[7], (HIDDEN,))
    wih2 = u(ks[8], (HIDDEN, HIDDEN));     whh2 = u(ks[9], (HIDDEN, HIDDEN))
    bih2 = u(ks[10], (HIDDEN,));           bhh2 = u(ks[11], (HIDDEN,))
    wfc = u(ks[12], (OUT_FEATURES, HIDDEN))
    bfc = u(ks[13], (OUT_FEATURES,))

    return {
        "wih0": wih0.T, "whh0": whh0.T, "b0": (bih0 + bhh0).reshape(1, HIDDEN),
        "wih1": wih1.T, "whh1": whh1.T, "b1": (bih1 + bhh1).reshape(1, HIDDEN),
        "wih2": wih2.T, "whh2": whh2.T, "b2": (bih2 + bhh2).reshape(1, HIDDEN),
        "wfc": wfc.T, "bfc": bfc.reshape(1, OUT_FEATURES),
    }


def pack_params(p):
    """Build the packed wavefront weights once (host side).

    wbig (right-multiply form):
        [[Whh0, Wih1, 0   ],
         [0,    Whh1, Wih2],
         [0,    0,    Whh2]]
    so  [h0,h1,h2] @ wbig gives each layer its recurrent term plus the input
    term coming from the layer below (fused along K).
    """
    H = HIDDEN
    Z = jnp.zeros((H, H), jnp.float32)
    wbig = jnp.concatenate([
        jnp.concatenate([p["whh0"], p["wih1"], Z], axis=1),
        jnp.concatenate([Z, p["whh1"], p["wih2"]], axis=1),
        jnp.concatenate([Z, Z, p["whh2"]], axis=1),
    ], axis=0)                                                   # [3H, 3H]
    bbig = jnp.concatenate([p["b0"], p["b1"], p["b2"]], axis=1)  # [1, 3H]
    wih0p = jnp.concatenate(
        [p["wih0"], jnp.zeros((INPUT_SIZE, (NUM_LAYERS - 1) * H), jnp.float32)],
        axis=1)                                                  # [I, 3H]
    return {"wih0p": wih0p, "wbig": wbig, "bbig": bbig,
            "wfc": p["wfc"], "bfc": p["bfc"]}


def rnn_forward_ref(x, p):
    """Pure-JAX reference with nn.RNN semantics (straightforward per-layer loop)."""
    B, T, _ = x.shape
    h0 = jnp.zeros((B, HIDDEN), jnp.float32)
    h1 = jnp.zeros((B, HIDDEN), jnp.float32)
    h2 = jnp.zeros((B, HIDDEN), jnp.float32)
    for t in range(T):
        x_t = x[:, t, :]
        h0 = jnp.tanh(x_t @ p["wih0"] + h0 @ p["whh0"] + p["b0"])
        h1 = jnp.tanh(h0 @ p["wih1"] + h1 @ p["whh1"] + p["b1"])
        h2 = jnp.tanh(h1 @ p["wih2"] + h2 @ p["whh2"] + p["b2"])
    return h2 @ p["wfc"] + p["bfc"]


if __name__ == "__main__":
    key = jax.random.PRNGKey(0)
    k_x, k_p = jax.random.split(key)

    B, T = 2, 8
    x = jax.random.normal(k_x, (B, T, INPUT_SIZE), jnp.float32)   # [B, T, I]
    params = init_params(k_p)
    packed = pack_params(params)

    out = rnn_forward(x, packed)
    out = jax.block_until_ready(out)

    ref = rnn_forward_ref(x, params)
    assert out.shape == (B, OUT_FEATURES)
    # Tolerance leaves headroom for matmul accumulation-order differences
    # between the fused K=48 wavefront matmul and the per-layer reference.
    assert jnp.allclose(out, ref, atol=1e-4, rtol=1e-4), (
        f"max abs err {jnp.max(jnp.abs(out - ref))}")

    print("KERNEL_OK")
</pallas_src>

<mosaic_0001>
module attributes {stable_mosaic.version = 11 : i64} {
  func.func @rnn_kernel(%arg0: memref<64x2xf32, #tpu.memory_space<vmem>>, %arg1: memref<2x48xf32, #tpu.memory_space<vmem>>, %arg2: memref<48x48xf32, #tpu.memory_space<vmem>>, %arg3: memref<10x48xf32, #tpu.memory_space<vmem>>, %arg4: memref<16x10xf32, #tpu.memory_space<vmem>>, %arg5: memref<1x10xf32, #tpu.memory_space<vmem>>, %arg6: memref<8x10xf32, #tpu.memory_space<vmem>>) attributes {dimension_semantics = [], scalar_prefetch = 0 : i64, scratch_operands = 0 : i64, tpu.core_type = #tpu.core_type<tc>} {
    %c0 = arith.constant 0 : index
    %c0_0 = arith.constant 0 : index
    %0 = vector.load %arg2[%c0, %c0_0] : memref<48x48xf32, #tpu.memory_space<vmem>>, vector<48x48xf32>
    %c0_1 = arith.constant 0 : index
    %c0_2 = arith.constant 0 : index
    %1 = vector.load %arg3[%c0_1, %c0_2] : memref<10x48xf32, #tpu.memory_space<vmem>>, vector<10x48xf32>
    %c0_3 = arith.constant 0 : index
    %c0_4 = arith.constant 0 : index
    %2 = vector.load %arg0[%c0_3, %c0_4] : memref<64x2xf32, #tpu.memory_space<vmem>>, vector<64x2xf32>
    %c0_5 = arith.constant 0 : index
    %c0_6 = arith.constant 0 : index
    %3 = vector.load %arg1[%c0_5, %c0_6] : memref<2x48xf32, #tpu.memory_space<vmem>>, vector<2x48xf32>
    %cst = arith.constant dense<0.000000e+00> : vector<64x48xf32>
    %4 = tpu.matmul %2, %3, %cst {dimension_numbers = #tpu.dot_dimension_numbers<[1], [0], [0], [1], [0, 0, 1, 1], [], []>} : vector<64x2xf32>, vector<2x48xf32>, vector<64x48xf32> -> vector<64x48xf32>
    %cst_7 = arith.constant 0.000000e+00 : f32
    %5 = vector.broadcast %cst_7 : f32 to vector<8x48xf32>
    %6 = vector.extract_strided_slice %1 {offsets = [0, 0], sizes = [1, 48], strides = [1, 1]} : vector<10x48xf32> to vector<1x48xf32>
    %7 = vector.extract_strided_slice %4 {offsets = [0, 0], sizes = [8, 48], strides = [1, 1]} : vector<64x48xf32> to vector<8x48xf32>
    %8 = vector.broadcast %6 : vector<1x48xf32> to vector<8x48xf32>
    %9 = arith.addf %8, %7 : vector<8x48xf32>
    %cst_8 = arith.constant dense<0.000000e+00> : vector<8x48xf32>
    %10 = tpu.matmul %5, %0, %cst_8 {dimension_numbers = #tpu.dot_dimension_numbers<[1], [0], [0], [1], [0, 0, 1, 1], [], []>} : vector<8x48xf32>, vector<48x48xf32>, vector<8x48xf32> -> vector<8x48xf32>
    %11 = arith.addf %10, %9 : vector<8x48xf32>
    %12 = math.tanh %11 : vector<8x48xf32>
    %13 = vector.extract_strided_slice %1 {offsets = [1, 0], sizes = [1, 48], strides = [1, 1]} : vector<10x48xf32> to vector<1x48xf32>
    %14 = vector.extract_strided_slice %4 {offsets = [8, 0], sizes = [8, 48], strides = [1, 1]} : vector<64x48xf32> to vector<8x48xf32>
    %15 = vector.broadcast %13 : vector<1x48xf32> to vector<8x48xf32>
    %16 = arith.addf %15, %14 : vector<8x48xf32>
    %cst_9 = arith.constant dense<0.000000e+00> : vector<8x48xf32>
    %17 = tpu.matmul %12, %0, %cst_9 {dimension_numbers = #tpu.dot_dimension_numbers<[1], [0], [0], [1], [0, 0, 1, 1], [], []>} : vector<8x48xf32>, vector<48x48xf32>, vector<8x48xf32> -> vector<8x48xf32>
    %18 = arith.addf %17, %16 : vector<8x48xf32>
    %19 = math.tanh %18 : vector<8x48xf32>
    %20 = vector.extract_strided_slice %1 {offsets = [2, 0], sizes = [1, 48], strides = [1, 1]} : vector<10x48xf32> to vector<1x48xf32>
    %21 = vector.extract_strided_slice %4 {offsets = [16, 0], sizes = [8, 48], strides = [1, 1]} : vector<64x48xf32> to vector<8x48xf32>
    %22 = vector.broadcast %20 : vector<1x48xf32> to vector<8x48xf32>
    %23 = arith.addf %22, %21 : vector<8x48xf32>
    %cst_10 = arith.constant dense<0.000000e+00> : vector<8x48xf32>
    %24 = tpu.matmul %19, %0, %cst_10 {dimension_numbers = #tpu.dot_dimension_numbers<[1], [0], [0], [1], [0, 0, 1, 1], [], []>} : vector<8x48xf32>, vector<48x48xf32>, vector<8x48xf32> -> vector<8x48xf32>
    %25 = arith.addf %24, %23 : vector<8x48xf32>
    %26 = math.tanh %25 : vector<8x48xf32>
    %27 = vector.extract_strided_slice %1 {offsets = [3, 0], sizes = [1, 48], strides = [1, 1]} : vector<10x48xf32> to vector<1x48xf32>
    %28 = vector.extract_strided_slice %4 {offsets = [24, 0], sizes = [8, 48], strides = [1, 1]} : vector<64x48xf32> to vector<8x48xf32>
    %29 = vector.broadcast %27 : vector<1x48xf32> to vector<8x48xf32>
    %30 = arith.addf %29, %28 : vector<8x48xf32>
    %cst_11 = arith.constant dense<0.000000e+00> : vector<8x48xf32>
    %31 = tpu.matmul %26, %0, %cst_11 {dimension_numbers = #tpu.dot_dimension_numbers<[1], [0], [0], [1], [0, 0, 1, 1], [], []>} : vector<8x48xf32>, vector<48x48xf32>, vector<8x48xf32> -> vector<8x48xf32>
    %32 = arith.addf %31, %30 : vector<8x48xf32>
    %33 = math.tanh %32 : vector<8x48xf32>
    %34 = vector.extract_strided_slice %1 {offsets = [4, 0], sizes = [1, 48], strides = [1, 1]} : vector<10x48xf32> to vector<1x48xf32>
    %35 = vector.extract_strided_slice %4 {offsets = [32, 0], sizes = [8, 48], strides = [1, 1]} : vector<64x48xf32> to vector<8x48xf32>
    %36 = vector.broadcast %34 : vector<1x48xf32> to vector<8x48xf32>
    %37 = arith.addf %36, %35 : vector<8x48xf32>
    %cst_12 = arith.constant dense<0.000000e+00> : vector<8x48xf32>
    %38 = tpu.matmul %33, %0, %cst_12 {dimension_numbers = #tpu.dot_dimension_numbers<[1], [0], [0], [1], [0, 0, 1, 1], [], []>} : vector<8x48xf32>, vector<48x48xf32>, vector<8x48xf32> -> vector<8x48xf32>
    %39 = arith.addf %38, %37 : vector<8x48xf32>
    %40 = math.tanh %39 : vector<8x48xf32>
    %41 = vector.extract_strided_slice %1 {offsets = [5, 0], sizes = [1, 48], strides = [1, 1]} : vector<10x48xf32> to vector<1x48xf32>
    %42 = vector.extract_strided_slice %4 {offsets = [40, 0], sizes = [8, 48], strides = [1, 1]} : vector<64x48xf32> to vector<8x48xf32>
    %43 = vector.broadcast %41 : vector<1x48xf32> to vector<8x48xf32>
    %44 = arith.addf %43, %42 : vector<8x48xf32>
    %cst_13 = arith.constant dense<0.000000e+00> : vector<8x48xf32>
    %45 = tpu.matmul %40, %0, %cst_13 {dimension_numbers = #tpu.dot_dimension_numbers<[1], [0], [0], [1], [0, 0, 1, 1], [], []>} : vector<8x48xf32>, vector<48x48xf32>, vector<8x48xf32> -> vector<8x48xf32>
    %46 = arith.addf %45, %44 : vector<8x48xf32>
    %47 = math.tanh %46 : vector<8x48xf32>
    %48 = vector.extract_strided_slice %1 {offsets = [6, 0], sizes = [1, 48], strides = [1, 1]} : vector<10x48xf32> to vector<1x48xf32>
    %49 = vector.extract_strided_slice %4 {offsets = [48, 0], sizes = [8, 48], strides = [1, 1]} : vector<64x48xf32> to vector<8x48xf32>
    %50 = vector.broadcast %48 : vector<1x48xf32> to vector<8x48xf32>
    %51 = arith.addf %50, %49 : vector<8x48xf32>
    %cst_14 = arith.constant dense<0.000000e+00> : vector<8x48xf32>
    %52 = tpu.matmul %47, %0, %cst_14 {dimension_numbers = #tpu.dot_dimension_numbers<[1], [0], [0], [1], [0, 0, 1, 1], [], []>} : vector<8x48xf32>, vector<48x48xf32>, vector<8x48xf32> -> vector<8x48xf32>
    %53 = arith.addf %52, %51 : vector<8x48xf32>
    %54 = math.tanh %53 : vector<8x48xf32>
    %55 = vector.extract_strided_slice %1 {offsets = [7, 0], sizes = [1, 48], strides = [1, 1]} : vector<10x48xf32> to vector<1x48xf32>
    %56 = vector.extract_strided_slice %4 {offsets = [56, 0], sizes = [8, 48], strides = [1, 1]} : vector<64x48xf32> to vector<8x48xf32>
    %57 = vector.broadcast %55 : vector<1x48xf32> to vector<8x48xf32>
    %58 = arith.addf %57, %56 : vector<8x48xf32>
    %cst_15 = arith.constant dense<0.000000e+00> : vector<8x48xf32>
    %59 = tpu.matmul %54, %0, %cst_15 {dimension_numbers = #tpu.dot_dimension_numbers<[1], [0], [0], [1], [0, 0, 1, 1], [], []>} : vector<8x48xf32>, vector<48x48xf32>, vector<8x48xf32> -> vector<8x48xf32>
    %60 = arith.addf %59, %58 : vector<8x48xf32>
    %61 = math.tanh %60 : vector<8x48xf32>
    %62 = vector.extract_strided_slice %1 {offsets = [8, 0], sizes = [1, 48], strides = [1, 1]} : vector<10x48xf32> to vector<1x48xf32>
    %cst_16 = arith.constant dense<0.000000e+00> : vector<8x48xf32>
    %63 = tpu.matmul %61, %0, %cst_16 {dimension_numbers = #tpu.dot_dimension_numbers<[1], [0], [0], [1], [0, 0, 1, 1], [], []>} : vector<8x48xf32>, vector<48x48xf32>, vector<8x48xf32> -> vector<8x48xf32>
    %64 = vector.broadcast %62 : vector<1x48xf32> to vector<8x48xf32>
    %65 = arith.addf %63, %64 : vector<8x48xf32>
    %66 = math.tanh %65 : vector<8x48xf32>
    %67 = vector.extract_strided_slice %1 {offsets = [9, 0], sizes = [1, 48], strides = [1, 1]} : vector<10x48xf32> to vector<1x48xf32>
    %cst_17 = arith.constant dense<0.000000e+00> : vector<8x48xf32>
    %68 = tpu.matmul %66, %0, %cst_17 {dimension_numbers = #tpu.dot_dimension_numbers<[1], [0], [0], [1], [0, 0, 1, 1], [], []>} : vector<8x48xf32>, vector<48x48xf32>, vector<8x48xf32> -> vector<8x48xf32>
    %69 = vector.broadcast %67 : vector<1x48xf32> to vector<8x48xf32>
    %70 = arith.addf %68, %69 : vector<8x48xf32>
    %71 = math.tanh %70 : vector<8x48xf32>
    %72 = vector.extract_strided_slice %71 {offsets = [0, 32], sizes = [8, 16], strides = [1, 1]} : vector<8x48xf32> to vector<8x16xf32>
    %c0_18 = arith.constant 0 : index
    %c0_19 = arith.constant 0 : index
    %73 = vector.load %arg4[%c0_18, %c0_19] : memref<16x10xf32, #tpu.memory_space<vmem>>, vector<16x10xf32>
    %cst_20 = arith.constant dense<0.000000e+00> : vector<8x10xf32>
    %74 = tpu.matmul %72, %73, %cst_20 {dimension_numbers = #tpu.dot_dimension_numbers<[1], [0], [0], [1], [0, 0, 1, 1], [], []>} : vector<8x16xf32>, vector<16x10xf32>, vector<8x10xf32> -> vector<8x10xf32>
    %c0_21 = arith.constant 0 : index
    %c0_22 = arith.constant 0 : index
    %75 = vector.load %arg5[%c0_21, %c0_22] : memref<1x10xf32, #tpu.memory_space<vmem>>, vector<1x10xf32>
    %76 = vector.broadcast %75 : vector<1x10xf32> to vector<8x10xf32>
    %77 = arith.addf %74, %76 : vector<8x10xf32>
    %c0_23 = arith.constant 0 : index
    %c0_24 = arith.constant 0 : index
    %78 = vector.load %arg6[%c0_23, %c0_24] : memref<8x10xf32, #tpu.memory_space<vmem>>, vector<8x10xf32>
    tpu.vector_store %arg6[%c0_23, %c0_24], %77 {strides = array<i32>} : memref<8x10xf32, #tpu.memory_space<vmem>>, vector<8x10xf32>,
    return
  }
}

</mosaic_0001>

<bundles_post_ra>
// kernel: tpu_custom_call.1
= control target key start
LH: loop header
LB: loop body
LE: loop exit
PB: predicated region body
PF: predicated region fallthrough
CT: control target
= control target key end

     0   :  { %11 = vsyncpa [#allocation3], 0  ;;  %s736_s0 = inlined_call_operand.vmem [shape: f32[64,2], index: 0, kind: input, shape index: {}]   ;;  %s737_s1 = inlined_call_operand.vmem [shape: f32[2,48], index: 1, kind: input, shape index: {}]   ;;  %s738_s2 = inlined_call_operand.vmem [shape: f32[48,48], index: 2, kind: input, shape index: {}]   ;;  %s739_s3 = inlined_call_operand.vmem [shape: f32[10,48], index: 3, kind: input, shape index: {}]   ;;  %s740_s4 = inlined_call_operand.hbm [shape: f32[16,10], index: 4, kind: input, shape index: {}]   ;;  %s741_s5 = inlined_call_operand.vmem [shape: f32[1,10], index: 5, kind: input, shape index: {}]   ;;  %s742_s6 = inlined_call_operand.hbm [shape: f32[8,10], index: 6, kind: output, shape index: {}]  }
   0x1   :  { %12 = vsyncpa [#allocation4], 0  ;;  %s25_s23 = sshll.u32 %s740_s4, 4  ;;  %s536_s24 = smov [#allocation2]   ;;  %s26_s23 = int_to_ptr.hbm [resolvable:$true] %s25_s23 }
   0x2   :  { %s27_s25 = sshll.u32 %s536_s24, 4  ;;  %s537_s26 = smov 128   ;;  %s28_s25 = int_to_ptr.vmem [resolvable:$true] %s27_s25 }
   0x3   :  { %s538_s27 = smov 8  }
   0x4   :  { %33 = dma.hbm_to_vmem [thread:$0]  %s26_s23, 256, %s28_s25, [#allocation3], %s537_s26, %s537_s26, %s538_s27  }
   0x5   :  { %532 = dma.done.wait [#allocation3], 256  }
   0x6   :  { %533 = vsyncadd [#allocation3], 4294967040  ;;  %vm82_vm0 = vcmask 1041408   ;;  %v583_v0 = vld [vmem:[%s738_s2 + $0x28] sm:$0xff]  ;;  %v588_v1 = vld [vmem:[%s738_s2 + $0x20] sm:$0xff]  ;;  %vm57_vm1 = vcmask 15360  }
   0x7   :  { %143 = vmatpush.msra.mxu1 %v583_v0  ;;  %v56_v2 = vld [vmem:[%s737_s1] sm:$0x3]  ;;  %169 = vmatpush.msra.mxu2 %v583_v0  ;;  %v598_v3 = vld [vmem:[%s738_s2 + $0x18] sm:$0xff]  ;;  %v608_v5 = vld [vmem:[%s738_s2 + $0x10] sm:$0xff]  ;;  %v539_v8 = vmov 0.0   ;;  %vm129_vm2 = vcmask 392192  }
   0x8   :  { %437 = vmatpush.msk.msra.mxu0 %vm82_vm0, %v56_v2  ;;  %v48_v4 = vld [vmem:[%s736_s0] sm:$0xff]  ;;  %456 = vmatpush.msk.msra.mxu3 %vm82_vm0, %v56_v2  ;;  %v616_v6 = vld [vmem:[%s738_s2 + $0x8] sm:$0xff]  ;;  %v55_v17 = vld [vmem:[%s736_s0 + $0x38] sm:$0xff]  ;;  %s540_s9 = smov 96   ;;  %vm395_vm3 = vcmask 130048   ;;  %s541_s11 = smov [#allocation5]  }
   0x9   :  { %144 = vmatpush.msra.mxu1 %v588_v1  ;;  %438 = vmatmul.msk.f32.vlgmr.msra.gmra.mxu0 %vm57_vm1, %v48_v4  ;;  %v624_v7 = vld [vmem:[%s738_s2] sm:$0xff]  ;;  %v49_v9 = vld [vmem:[%s736_s0 + $0x8] sm:$0xff]  ;;  %v50_v18 = vld [vmem:[%s736_s0 + $0x10] sm:$0xff]  ;;  %s425_s12 = sshll.u32 %s541_s11, 4  ;;  %s427_s1 = sshll.u32 %s742_s6, 4  ;;  %vm418_vm4 = vcmask 80896   ;;  %s426_s12 = int_to_ptr.vmem [resolvable:$true] %s425_s12  ;;  %s428_s1 = int_to_ptr.hbm [resolvable:$true] %s427_s1 }
   0xa   :  { %170 = vmatpush.msra.mxu2 %v588_v1  ;;  %195 = vmatpush.msrb.mxu3 %v583_v0  ;;  %v660_v10 = vld [vmem:[%s739_s3] sm:$0xff]  ;;  %v51_v25 = vld [vmem:[%s736_s0 + $0x18] sm:$0xff]  ;;  %v53_v40 = vld [vmem:[%s736_s0 + $0x28] sm:$0xff] }
   0xb   :  { %145 = vmatpush.msra.mxu1 %v598_v3  ;;  %v127_v11 = vperm.slane %v660_v10, 0  ;;  %445 = vmatmul.msk.f32.vlgmr.msra.gmra.mxu3 %vm57_vm1, %v55_v17  ;;  %v154_v19 = vperm.slane %v660_v10, 1  ;;  %v180_v27 = vperm.slane %v660_v10, 2  ;;  %v52_v33 = vld [vmem:[%s736_s0 + $0x20] sm:$0xff]  ;;  %v206_v34 = vperm.slane %v660_v10, 3  ;;  %v54_v47 = vld [vmem:[%s736_s0 + $0x30] sm:$0xff] }
   0xc   :  { %171 = vmatpush.msra.mxu2 %v598_v3  ;;  %196 = vmatpush.msrb.mxu3 %v588_v1  ;;  %v232_v41 = vperm.slane %v660_v10, 4  ;;  %v258_v48 = vperm.slane %v660_v10, 5  ;;  %v284_v54 = vperm.slane %v660_v10, 6  ;;  %v310_v60 = vperm.slane %v660_v10, 7 }
   0xd   :  { %146 = vmatpush.msra.mxu1 %v608_v5 }
   0xe   :  { %172 = vmatpush.msra.mxu2 %v608_v5  ;;  %197 = vmatpush.msrb.mxu3 %v598_v3 }
   0xf   :  { %147 = vmatpush.msra.mxu1 %v616_v6 }
  0x10   :  { %173 = vmatpush.msra.mxu2 %v616_v6  ;;  %198 = vmatpush.msrb.mxu3 %v608_v5 }
  0x11   :  { %148 = vmatpush.msra.mxu1 %v624_v7  ;;  %439 = vmatmul.msk.f32.gmra.mxu0 %vm57_vm1, %v49_v9 }
  0x12   :  { %149 = vmatmul.f32.vlgmr.msra.gmra.mxu1 %v539_v8  ;;  %174 = vmatpush.msra.mxu2 %v624_v7 }
  0x13   :  { %199 = vmatpush.msrb.mxu3 %v616_v6  ;;  %221 = vmatpush.msrb.mxu1 %v583_v0 }
  0x14   :  { %247 = vmatpush.msrb.mxu2 %v583_v0 }
  0x15   :  { %200 = vmatpush.msrb.mxu3 %v624_v7  ;;  %222 = vmatpush.msrb.mxu1 %v588_v1 }
  0x16   :  { %248 = vmatpush.msrb.mxu2 %v588_v1 }
  0x17   :  { %223 = vmatpush.msrb.mxu1 %v598_v3  ;;  %273 = vmatpush.msra.mxu3 %v583_v0 }
  0x18   :  { %249 = vmatpush.msrb.mxu2 %v598_v3 }
  0x19   :  { %224 = vmatpush.msrb.mxu1 %v608_v5  ;;  %274 = vmatpush.msra.mxu3 %v588_v1 }
  0x1a   :  { %250 = vmatpush.msrb.mxu2 %v608_v5  ;;  %440 = vmatmul.msk.f32.gmra.mxu0 %vm57_vm1, %v50_v18 }
  0x1b   :  { %225 = vmatpush.msrb.mxu1 %v616_v6  ;;  %275 = vmatpush.msra.mxu3 %v598_v3 }
  0x1c   :  { %251 = vmatpush.msrb.mxu2 %v616_v6 }
  0x1d   :  { %226 = vmatpush.msrb.mxu1 %v624_v7  ;;  %276 = vmatpush.msra.mxu3 %v608_v5 }
  0x1e   :  { %252 = vmatpush.msrb.mxu2 %v624_v7 }
  0x1f   :  { %299 = vmatpush.msra.mxu1 %v583_v0  ;;  %277 = vmatpush.msra.mxu3 %v616_v6 }
  0x21   :  { %300 = vmatpush.msra.mxu1 %v588_v1  ;;  %278 = vmatpush.msra.mxu3 %v624_v7 }
  0x22   :  { %441 = vmatmul.msk.f32.gmra.mxu0 %vm57_vm1, %v51_v25 }
  0x23   :  { %301 = vmatpush.msra.mxu1 %v598_v3 }
  0x25   :  { %302 = vmatpush.msra.mxu1 %v608_v5 }
  0x27   :  { %303 = vmatpush.msra.mxu1 %v616_v6 }
  0x29   :  { %304 = vmatpush.msra.mxu1 %v624_v7 }
  0x2a   :  { %442 = vmatmul.msk.f32.gmra.mxu0 %vm57_vm1, %v52_v33 }
  0x32   :  { %443 = vmatmul.msk.f32.gmra.mxu0 %vm57_vm1, %v53_v40 }
  0x3a   :  { %444 = vmatmul.msk.f32.gmra.mxu0 %vm57_vm1, %v54_v47 }
  0x86   :  { %v103_v12 = vpop.f32.mrf.mxu0 }
  0x87   :  { %v128_v13 = vadd.f32 %v127_v11, %v103_v12 }
  0x8e   :  { %v106_v20 = vpop.f32.mrf.mxu0  ;;  %v124_v26 = vpop.f32.mrf.mxu3 }
  0x8f   :  { %v150_v14 = vpop.f32.mrf.mxu1  ;;  %v155_v21 = vadd.f32 %v154_v19, %v106_v20  ;;  %v311_v61 = vadd.f32 %v310_v60, %v124_v26 }
  0x90   :  { %v151_v15 = vadd.f32 %v150_v14, %v128_v13  ;;  %v463_v13 = vld [vmem:[%s741_s5] ss:$0 sm:$0xff] }
  0x92   :  { %464 = vtanh.f32 %v151_v15 }
  0x97   :  { %v109_v28 = vpop.f32.mrf.mxu0 }
  0x98   :  { %v465_v16 = vpop.eup %464  ;;  %v181_v29 = vadd.f32 %v180_v27, %v109_v28 }
  0x99   :  { %446 = vmatmul.msk.f32.vlgmr.msra.gmra.mxu2 %vm129_vm2, %v465_v16 }
  0x9a   :  { %325 = vmatpush.msra.mxu2 %v583_v0 }
  0x9c   :  { %326 = vmatpush.msra.mxu2 %v588_v1 }
  0x9e   :  { %327 = vmatpush.msra.mxu2 %v598_v3 }
  0x9f   :  { %v112_v35 = vpop.f32.mrf.mxu0 }
  0xa0   :  { %328 = vmatpush.msra.mxu2 %v608_v5  ;;  %v207_v36 = vadd.f32 %v206_v34, %v112_v35 }
  0xa2   :  { %329 = vmatpush.msra.mxu2 %v616_v6 }
  0xa4   :  { %330 = vmatpush.msra.mxu2 %v624_v7 }
  0xa7   :  { %v115_v42 = vpop.f32.mrf.mxu0 }
  0xa8   :  { %v233_v43 = vadd.f32 %v232_v41, %v115_v42 }
  0xaf   :  { %v118_v49 = vpop.f32.mrf.mxu0 }
  0xb0   :  { %v259_v50 = vadd.f32 %v258_v48, %v118_v49 }
  0xb7   :  { %v121_v55 = vpop.f32.mrf.mxu0 }
  0xb8   :  { %v285_v56 = vadd.f32 %v284_v54, %v121_v55 }
 0x11c   :  { %v176_v22 = vpop.f32.mrf.mxu2 }
 0x11d   :  { %v177_v23 = vadd.f32 %v176_v22, %v155_v21 }
 0x11f   :  { %466 = vtanh.f32 %v177_v23 }
 0x125   :  { %v467_v24 = vpop.eup %466 }
 0x126   :  { %447 = vmatmul.msk.f32.vlgmr.msrb.gmra.mxu3 %vm129_vm2, %v467_v24 }
 0x127   :  { %350 = vmatpush.msrb.mxu3 %v583_v0 }
 0x129   :  { %351 = vmatpush.msrb.mxu3 %v588_v1 }
 0x12b   :  { %352 = vmatpush.msrb.mxu3 %v598_v3 }
 0x12d   :  { %353 = vmatpush.msrb.mxu3 %v608_v5 }
 0x12f   :  { %354 = vmatpush.msrb.mxu3 %v616_v6 }
 0x131   :  { %355 = vmatpush.msrb.mxu3 %v624_v7 }
 0x1a9   :  { %v202_v30 = vpop.f32.mrf.mxu3 }
 0x1aa   :  { %v203_v31 = vadd.f32 %v202_v30, %v181_v29 }
 0x1ac   :  { %468 = vtanh.f32 %v203_v31 }
 0x1b2   :  { %v469_v32 = vpop.eup %468 }
 0x1b3   :  { %448 = vmatmul.msk.f32.vlgmr.msrb.gmra.mxu1 %vm129_vm2, %v469_v32 }
 0x1b4   :  { %375 = vmatpush.msrb.mxu1 %v583_v0 }
 0x1b6   :  { %376 = vmatpush.msrb.mxu1 %v588_v1  ;;  %v47_v1 = vld [vmem:[%s739_s3 + $0x8] sm:$0x3] }
 0x1b7   :  { %v336_v2 = vperm.slane %v47_v1, 0  ;;  %v361_v8 = vperm.slane %v47_v1, 1 }
 0x1b8   :  { %377 = vmatpush.msrb.mxu1 %v598_v3 }
 0x1ba   :  { %378 = vmatpush.msrb.mxu1 %v608_v5 }
 0x1bc   :  { %379 = vmatpush.msrb.mxu1 %v616_v6  ;;  %v387_v6 = vld [vmem:[#allocation2 + $0x8] sm:$0xff] }
 0x1be   :  { %380 = vmatpush.msrb.mxu1 %v624_v7  ;;  %v386_v7 = vld [vmem:[#allocation2] sm:$0xff] }
 0x230   :  { %v228_v37 = vpop.f32.mrf.mxu1 }
 0x231   :  { %v229_v38 = vadd.f32 %v228_v37, %v207_v36 }
 0x233   :  { %470 = vtanh.f32 %v229_v38 }
 0x239   :  { %v471_v39 = vpop.eup %470 }
 0x23a   :  { %449 = vmatmul.msk.f32.vlgmr.msrb.gmra.mxu2 %vm129_vm2, %v471_v39 }
 0x23b   :  { %412 = vmatpush.msrb.mxu2 %v387_v6 }
 0x23d   :  { %413 = vmatpush.msrb.mxu2 %v386_v7 }
 0x2bd   :  { %v254_v44 = vpop.f32.mrf.mxu2 }
 0x2be   :  { %v255_v45 = vadd.f32 %v254_v44, %v233_v43 }
 0x2c0   :  { %472 = vtanh.f32 %v255_v45 }
 0x2c6   :  { %v473_v46 = vpop.eup %472 }
 0x2c7   :  { %450 = vmatmul.msk.f32.vlgmr.msra.gmra.mxu3 %vm129_vm2, %v473_v46 }
 0x34a   :  { %v280_v51 = vpop.f32.mrf.mxu3 }
 0x34b   :  { %v281_v52 = vadd.f32 %v280_v51, %v259_v50 }
 0x34d   :  { %474 = vtanh.f32 %v281_v52 }
 0x353   :  { %v475_v53 = vpop.eup %474 }
 0x354   :  { %451 = vmatmul.msk.f32.vlgmr.msra.gmra.mxu1 %vm129_vm2, %v475_v53 }
 0x3d1   :  { %v306_v57 = vpop.f32.mrf.mxu1 }
 0x3d2   :  { %v307_v58 = vadd.f32 %v306_v57, %v285_v56 }
 0x3d4   :  { %476 = vtanh.f32 %v307_v58 }
 0x3da   :  { %v477_v59 = vpop.eup %476 }
 0x3db   :  { %452 = vmatmul.msk.f32.vlgmr.msra.gmra.mxu2 %vm129_vm2, %v477_v59 }
 0x45e   :  { %v332_v62 = vpop.f32.mrf.mxu2 }
 0x45f   :  { %v333_v63 = vadd.f32 %v332_v62, %v311_v61 }
 0x461   :  { %478 = vtanh.f32 %v333_v63 }
 0x467   :  { %v479_v0 = vpop.eup %478 }
 0x468   :  { %453 = vmatmul.msk.f32.vlgmr.msrb.gmra.mxu3 %vm129_vm2, %v479_v0 }
 0x4eb   :  { %v357_v3 = vpop.f32.mrf.mxu3 }
 0x4ec   :  { %v358_v4 = vadd.f32 %v357_v3, %v336_v2 }
 0x4ee   :  { %480 = vtanh.f32 %v358_v4 }
 0x4f4   :  { %v481_v5 = vpop.eup %480 }
 0x4f5   :  { %454 = vmatmul.msk.f32.vlgmr.msrb.gmra.mxu1 %vm129_vm2, %v481_v5 }
 0x572   :  { %v382_v9 = vpop.f32.mrf.mxu1 }
 0x573   :  { %v383_v10 = vadd.f32 %v382_v9, %v361_v8 }
 0x575   :  { %482 = vtanh.f32 %v383_v10 }
 0x57b   :  { %v483_v11 = vpop.eup %482 }
 0x57c   :  { %393 = vrot.lane.b32.xlu0 %v483_v11, %s540_s9 }
 0x5ee   :  { %v394_v12 = vpop.permute.xlu0 %393 }
 0x5ef   :  { %455 = vmatmul.msk.f32.vlgmr.msrb.gmra.mxu2 %vm395_vm3, %v394_v12 }
 0x672   :  { %v415_v14 = vpop.f32.mrf.mxu2 }
 0x673   :  { %v416_v15 = vadd.f32 %v463_v13, %v415_v14 }
 0x675   :  { %419 = vst.msk [vmem:[#allocation5] sm:$0xff] %vm418_vm4, %v416_v15 }
 0x676   :  { %430 = dma.vmem_to_hbm [thread:$0]  %s426_s12, 128, %s428_s1, [#allocation4]  }
 0x677   :  { %534 = dma.done.wait [#allocation4], 128  }
 0x678   :  { %535 = vsyncadd [#allocation4], 4294967168 }
 0x679   :  { %435 = vsyncpa [#allocation3], 1 }
 0x67a   :  { %436 = vsyncpa [#allocation4], 1 }

</bundles_post_ra>
